<compile_context>
chip_gen: v7x
topology: tpu7x:2x2x1
jax: 0.10.0
libtpu: 0.0.40
codegen_flags: <defaults>
</compile_context>

<pallas_src>
import functools

import jax
import jax.numpy as jnp
from jax import lax
from jax.experimental import pallas as pl
from jax.experimental.pallas import tpu as pltpu


def _round_up(x, m):
    return ((x + m - 1) // m) * m


def focal_loss_kernel(logits_ref, targets_ref, weights_ref,
                      out_loss_ref, out_w_ref,
                      loss_acc, w_acc,
                      *, gamma, n_total, tile_n, tiles_per_split):
    t_idx = pl.program_id(1)

    @pl.when(t_idx == 0)
    def _init():
        loss_acc[...] = jnp.zeros_like(loss_acc)
        w_acc[...] = jnp.zeros_like(w_acc)

    logits = logits_ref[...].astype(jnp.float32)    # (T, C), promoted in-reg
    targets = targets_ref[...]                      # (T, 1) int32
    w_row = weights_ref[...].astype(jnp.float32)    # (1, C)

    tn, c = logits.shape

    # Logical tile index (may exceed the real tile count for the padded split;
    # those rows are all >= n_total and therefore fully masked below).
    logical_tile = pl.program_id(0) * tiles_per_split + t_idx
    row_ids = logical_tile * tile_n + lax.broadcasted_iota(jnp.int32, (tn, 1), 0)
    valid = row_ids < n_total

    # (1, C) class iota broadcast against (T, 1) targets -> (T, C) one-hot.
    cls = lax.broadcasted_iota(jnp.int32, (1, c), 1)
    onehot = cls == targets

    # Numerically-stable log-softmax pieces.
    m = jnp.max(logits, axis=-1, keepdims=True)             # (T, 1)
    shifted = logits - m
    sum_exp = jnp.sum(jnp.exp(shifted), axis=-1, keepdims=True)

    # Masked one-hot reductions sharing the same mask.
    shifted_t = jnp.sum(jnp.where(onehot, shifted, 0.0), axis=-1, keepdims=True)
    w = jnp.sum(jnp.where(onehot, w_row, 0.0), axis=-1, keepdims=True)

    ce = jnp.log(sum_exp) - shifted_t       # per-sample cross-entropy
    pt = jnp.exp(-ce)                       # exact, on the idle EUP slot

    one_minus_pt = 1.0 - pt
    if gamma == 2:
        focal = one_minus_pt * one_minus_pt
    elif isinstance(gamma, int):
        focal = lax.integer_pow(one_minus_pt, gamma)
    else:
        focal = one_minus_pt ** gamma       # non-integer gamma -> float pow

    # Select (not multiply) so garbage logits in padded rows cannot propagate.
    loss_terms = jnp.where(valid, w * focal * ce, 0.0)
    w_terms = jnp.where(valid, w, 0.0)

    loss_acc[...] += jnp.sum(loss_terms, keepdims=True)
    w_acc[...] += jnp.sum(w_terms, keepdims=True)

    @pl.when(t_idx == pl.num_programs(1) - 1)
    def _final():
        out_loss_ref[...] = loss_acc[...]
        out_w_ref[...] = w_acc[...]


def focal_loss(inputs, targets, weights, gamma=2, tile_n=None):
    """inputs: (N, C) logits (any float dtype), targets: (N,) ints, weights: (C,)."""
    n, c = inputs.shape
    targets2 = targets.astype(jnp.int32).reshape(n, 1)
    weights2 = weights.reshape(1, c)

    itemsize = jnp.dtype(inputs.dtype).itemsize
    # Sublane packing: f32 -> 8 rows/vreg, bf16 -> 16, int8/fp8 -> 32.
    row_align = {4: 8, 2: 16, 1: 32}.get(itemsize, 8)

    # VMEM cost of one batch row across one buffer set:
    #   logits row lane-padded to max(C,128) lanes  +  targets row lane-padded
    #   to 128 lanes of int32 (512 B).
    padded_c = max(_round_up(c, 128), 128)
    row_bytes = padded_c * itemsize + 128 * 4

    if tile_n is None:
        # ~12 MiB per buffer set -> ~24 MiB double-buffered; MiB-scale DMAs
        # amortize the ~0.35 us per-grid-step overhead on all generations.
        budget = 12 * 1024 * 1024
        tile_n = max(row_align, (budget // row_bytes) // row_align * row_align)
    tile_n = int(min(tile_n, _round_up(n, row_align)))
    tile_n = max(row_align, (tile_n // row_align) * row_align)

    num_tiles = pl.cdiv(n, tile_n)

    # Two independent partial reductions -> both TensorCores on v7x.  Avoid the
    # split when it would add a wasted (fully masked, but still DMA'd) tile on
    # a small odd tile count.
    if num_tiles >= 2 and (num_tiles % 2 == 0 or num_tiles >= 8):
        num_splits = 2
    else:
        num_splits = 1
    tiles_per_split = pl.cdiv(num_tiles, num_splits)

    # Explicit scoped-VMEM limit: 2 buffers x (logits tile + padded targets
    # tile) + headroom; safe on v5e/v6e (128 MiB physical) and v7x (64 MiB).
    per_set = tile_n * padded_c * itemsize + tile_n * 128 * 4
    vmem_limit = int(min(56 * 1024 * 1024,
                         max(32 * 1024 * 1024, 2 * per_set + 8 * 1024 * 1024)))

    def _logits_map(s, t):
        b = jnp.minimum(s * tiles_per_split + t, num_tiles - 1)
        return (b, 0)

    def _targets_map(s, t):
        b = jnp.minimum(s * tiles_per_split + t, num_tiles - 1)
        return (b, 0)

    grid_spec = pltpu.PrefetchScalarGridSpec(
        num_scalar_prefetch=0,
        grid=(num_splits, tiles_per_split),
        in_specs=[
            pl.BlockSpec((tile_n, c), _logits_map),          # logits tile
            pl.BlockSpec((tile_n, 1), _targets_map),         # targets tile
            pl.BlockSpec((1, c), lambda s, t: (0, 0)),       # class weights
        ],
        out_specs=[
            pl.BlockSpec((None, 1, 1), lambda s, t: (s, 0, 0)),  # sum(loss) per split
            pl.BlockSpec((None, 1, 1), lambda s, t: (s, 0, 0)),  # sum(w) per split
        ],
        scratch_shapes=[
            pltpu.VMEM((1, 1), jnp.float32),   # running sum(loss)
            pltpu.VMEM((1, 1), jnp.float32),   # running sum(w)
        ],
    )

    out_loss, out_w = pl.pallas_call(
        functools.partial(focal_loss_kernel, gamma=gamma, n_total=n,
                          tile_n=tile_n, tiles_per_split=tiles_per_split),
        out_shape=(jax.ShapeDtypeStruct((num_splits, 1, 1), jnp.float32),
                   jax.ShapeDtypeStruct((num_splits, 1, 1), jnp.float32)),
        grid_spec=grid_spec,
        compiler_params=pltpu.CompilerParams(
            dimension_semantics=("parallel", "arbitrary"),
            vmem_limit_bytes=vmem_limit),
    )(inputs, targets2, weights2)

    # Combine the per-split partial sums and do the final divide here.
    # NOTE: matches PyTorch semantics -- no guard if sum(w) == 0.
    return jnp.sum(out_loss) / jnp.sum(out_w)


def _focal_loss_ref(logits, targets, weights, gamma=2):
    logp = jax.nn.log_softmax(logits.astype(jnp.float32), axis=-1)
    ce = -jnp.take_along_axis(logp, targets[:, None], axis=-1)[:, 0]
    pt = jnp.exp(-ce)
    w = weights.astype(jnp.float32)[targets]
    return jnp.sum(w * (1.0 - pt) ** gamma * ce) / jnp.sum(w)


if __name__ == "__main__":
    key = jax.random.PRNGKey(0)
    k1, k2, k3 = jax.random.split(key, 3)

    N, C = 64, 10  # small batch of logits over 10 classes
    logits = jax.random.normal(k1, (N, C), dtype=jnp.float32)
    targets = jax.random.randint(k2, (N,), 0, C, dtype=jnp.int32)
    class_weights = jax.random.uniform(
        k3, (C,), dtype=jnp.float32, minval=0.5, maxval=2.0
    )

    loss = focal_loss(logits, targets, class_weights, gamma=2)
    jax.block_until_ready(loss)

    ref = _focal_loss_ref(logits, targets, class_weights, gamma=2)
    assert jnp.allclose(loss, ref, rtol=1e-4, atol=1e-5), (loss, ref)

    print("KERNEL_OK")
</pallas_src>

<mosaic_0001>
module attributes {stable_mosaic.version = 11 : i64} {
  func.func @focal_loss_kernel(%arg0: i32, %arg1: i32, %arg2: memref<64x10xf32, #tpu.memory_space<vmem>>, %arg3: memref<64x1xi32, #tpu.memory_space<vmem>>, %arg4: memref<1x10xf32, #tpu.memory_space<vmem>>, %arg5: memref<1x1x1xf32, #tpu.memory_space<vmem>>, %arg6: memref<1x1x1xf32, #tpu.memory_space<vmem>>, %arg7: memref<1x1xf32, #tpu.memory_space<vmem>>, %arg8: memref<1x1xf32, #tpu.memory_space<vmem>>) attributes {dimension_semantics = [#tpu.dimension_semantics<parallel>, #tpu.dimension_semantics<arbitrary>], iteration_bounds = array<i64: 1, 1>, scalar_prefetch = 0 : i64, scratch_operands = 2 : i64, tpu.core_type = #tpu.core_type<tc>, window_params = [{transform_indices = @transform_0, window_bounds = array<i64: 64, 10>}, {transform_indices = @transform_1, window_bounds = array<i64: 64, 1>}, {pipeline_mode = #tpu.pipeline_mode<synchronous>, transform_indices = @transform_2, window_bounds = array<i64: 1, 10>}, {transform_indices = @transform_3, window_bounds = array<i64: 1, 1, 1>}, {transform_indices = @transform_4, window_bounds = array<i64: 1, 1, 1>}]} {
    %c0_i32 = arith.constant 0 : i32
    %0 = arith.cmpi eq, %arg1, %c0_i32 : i32
    %1 = arith.extui %0 : i1 to i32
    %c0_i32_0 = arith.constant 0 : i32
    %2 = arith.cmpi ne, %1, %c0_i32_0 : i32
    scf.if %2 {
      %cst_28 = arith.constant 0.000000e+00 : f32
      %68 = vector.broadcast %cst_28 : f32 to vector<1x1xf32>
      %c0_29 = arith.constant 0 : index
      %c0_30 = arith.constant 0 : index
      %69 = vector.load %arg7[%c0_29, %c0_30] : memref<1x1xf32, #tpu.memory_space<vmem>>, vector<1x1xf32>
      tpu.vector_store %arg7[%c0_29, %c0_30], %68 {strides = array<i32>} : memref<1x1xf32, #tpu.memory_space<vmem>>, vector<1x1xf32>,
      %cst_31 = arith.constant 0.000000e+00 : f32
      %70 = vector.broadcast %cst_31 : f32 to vector<1x1xf32>
      %c0_32 = arith.constant 0 : index
      %c0_33 = arith.constant 0 : index
      %71 = vector.load %arg8[%c0_32, %c0_33] : memref<1x1xf32, #tpu.memory_space<vmem>>, vector<1x1xf32>
      tpu.vector_store %arg8[%c0_32, %c0_33], %70 {strides = array<i32>} : memref<1x1xf32, #tpu.memory_space<vmem>>, vector<1x1xf32>,
    } else {
    }
    %c0 = arith.constant 0 : index
    %c0_1 = arith.constant 0 : index
    %3 = vector.load %arg2[%c0, %c0_1] : memref<64x10xf32, #tpu.memory_space<vmem>>, vector<64x10xf32>
    %c0_2 = arith.constant 0 : index
    %c0_3 = arith.constant 0 : index
    %4 = vector.load %arg3[%c0_2, %c0_3] : memref<64x1xi32, #tpu.memory_space<vmem>>, vector<64x1xi32>
    %c0_4 = arith.constant 0 : index
    %c0_5 = arith.constant 0 : index
    %5 = vector.load %arg4[%c0_4, %c0_5] : memref<1x10xf32, #tpu.memory_space<vmem>>, vector<1x10xf32>
    %c1_i32 = arith.constant 1 : i32
    %6 = arith.muli %arg0, %c1_i32 : i32
    %7 = arith.addi %6, %arg1 : i32
    %c64_i32 = arith.constant 64 : i32
    %8 = arith.muli %7, %c64_i32 : i32
    %9 = tpu.iota {dimensions = array<i32: 0>} : vector<64x1xi32>
    %10 = vector.broadcast %8 : i32 to vector<64x1xi32>
    %11 = arith.addi %10, %9 : vector<64x1xi32>
    %c64_i32_6 = arith.constant 64 : i32
    %12 = vector.broadcast %c64_i32_6 : i32 to vector<64x1xi32>
    %13 = arith.cmpi slt, %11, %12 : vector<64x1xi32>
    %14 = tpu.iota {dimensions = array<i32: 1>} : vector<1x10xi32>
    %15 = vector.broadcast %14 : vector<1x10xi32> to vector<64x10xi32>
    %16 = vector.broadcast %4 : vector<64x1xi32> to vector<64x10xi32>
    %17 = arith.cmpi eq, %15, %16 : vector<64x10xi32>
    %cst = arith.constant dense<0xFF800000> : vector<64xf32>
    %18 = vector.multi_reduction <maximumf>, %3, %cst [1] : vector<64x10xf32> to vector<64xf32>
    %19 = vector.shape_cast %18 : vector<64xf32> to vector<64x1xf32>
    %20 = vector.broadcast %19 : vector<64x1xf32> to vector<64x10xf32>
    %21 = arith.subf %3, %20 : vector<64x10xf32>
    %22 = math.exp %21 : vector<64x10xf32>
    %cst_7 = arith.constant dense<0.000000e+00> : vector<64xf32>
    %23 = vector.multi_reduction <add>, %22, %cst_7 [1] : vector<64x10xf32> to vector<64xf32>
    %24 = vector.shape_cast %23 : vector<64xf32> to vector<64x1xf32>
    %cst_8 = arith.constant 0.000000e+00 : f32
    %25 = vector.broadcast %cst_8 : f32 to vector<64x10xf32>
    %26 = arith.select %17, %21, %25 : vector<64x10xi1>, vector<64x10xf32>
    %cst_9 = arith.constant dense<0.000000e+00> : vector<64xf32>
    %27 = vector.multi_reduction <add>, %26, %cst_9 [1] : vector<64x10xf32> to vector<64xf32>
    %28 = vector.shape_cast %27 : vector<64xf32> to vector<64x1xf32>
    %cst_10 = arith.constant 0.000000e+00 : f32
    %29 = vector.shape_cast %5 : vector<1x10xf32> to vector<1x10xf32>
    %30 = vector.broadcast %29 : vector<1x10xf32> to vector<64x10xf32>
    %31 = vector.broadcast %cst_10 : f32 to vector<64x10xf32>
    %32 = arith.select %17, %30, %31 : vector<64x10xi1>, vector<64x10xf32>
    %cst_11 = arith.constant dense<0.000000e+00> : vector<64xf32>
    %33 = vector.multi_reduction <add>, %32, %cst_11 [1] : vector<64x10xf32> to vector<64xf32>
    %34 = vector.shape_cast %33 : vector<64xf32> to vector<64x1xf32>
    %35 = math.log %24 : vector<64x1xf32>
    %36 = arith.subf %35, %28 : vector<64x1xf32>
    %cst_12 = arith.constant 0.000000e+00 : f32
    %37 = vector.broadcast %cst_12 : f32 to vector<64x1xf32>
    %38 = arith.subf %37, %36 : vector<64x1xf32>
    %39 = math.exp %38 : vector<64x1xf32>
    %cst_13 = arith.constant 1.000000e+00 : f32
    %40 = vector.broadcast %cst_13 : f32 to vector<64x1xf32>
    %41 = arith.subf %40, %39 : vector<64x1xf32>
    %42 = arith.mulf %41, %41 : vector<64x1xf32>
    %43 = arith.mulf %34, %42 : vector<64x1xf32>
    %44 = arith.mulf %43, %36 : vector<64x1xf32>
    %cst_14 = arith.constant 0.000000e+00 : f32
    %45 = vector.broadcast %cst_14 : f32 to vector<64x1xf32>
    %46 = arith.select %13, %44, %45 : vector<64x1xi1>, vector<64x1xf32>
    %cst_15 = arith.constant 0.000000e+00 : f32
    %47 = vector.broadcast %cst_15 : f32 to vector<64x1xf32>
    %48 = arith.select %13, %34, %47 : vector<64x1xi1>, vector<64x1xf32>
    %c0_16 = arith.constant 0 : index
    %c0_17 = arith.constant 0 : index
    %49 = vector.load %arg7[%c0_16, %c0_17] : memref<1x1xf32, #tpu.memory_space<vmem>>, vector<1x1xf32>
    %50 = vector.shape_cast %46 : vector<64x1xf32> to vector<1x64x1xf32>
    %cst_18 = arith.constant dense<0.000000e+00> : vector<1xf32>
    %51 = vector.multi_reduction <add>, %50, %cst_18 [1, 2] : vector<1x64x1xf32> to vector<1xf32>
    %52 = vector.shape_cast %51 : vector<1xf32> to vector<1x1x1xf32>
    %53 = vector.extract %52[0, 0, 0] : f32 from vector<1x1x1xf32>
    %54 = vector.broadcast %53 : f32 to vector<1x1xf32>
    %55 = arith.addf %49, %54 : vector<1x1xf32>
    %c0_19 = arith.constant 0 : index
    %c0_20 = arith.constant 0 : index
    %56 = vector.load %arg7[%c0_19, %c0_20] : memref<1x1xf32, #tpu.memory_space<vmem>>, vector<1x1xf32>
    tpu.vector_store %arg7[%c0_19, %c0_20], %55 {strides = array<i32>} : memref<1x1xf32, #tpu.memory_space<vmem>>, vector<1x1xf32>,
    %c0_21 = arith.constant 0 : index
    %c0_22 = arith.constant 0 : index
    %57 = vector.load %arg8[%c0_21, %c0_22] : memref<1x1xf32, #tpu.memory_space<vmem>>, vector<1x1xf32>
    %58 = vector.shape_cast %48 : vector<64x1xf32> to vector<1x64x1xf32>
    %cst_23 = arith.constant dense<0.000000e+00> : vector<1xf32>
    %59 = vector.multi_reduction <add>, %58, %cst_23 [1, 2] : vector<1x64x1xf32> to vector<1xf32>
    %60 = vector.shape_cast %59 : vector<1xf32> to vector<1x1x1xf32>
    %61 = vector.extract %60[0, 0, 0] : f32 from vector<1x1x1xf32>
    %62 = vector.broadcast %61 : f32 to vector<1x1xf32>
    %63 = arith.addf %57, %62 : vector<1x1xf32>
    %c0_24 = arith.constant 0 : index
    %c0_25 = arith.constant 0 : index
    %64 = vector.load %arg8[%c0_24, %c0_25] : memref<1x1xf32, #tpu.memory_space<vmem>>, vector<1x1xf32>
    tpu.vector_store %arg8[%c0_24, %c0_25], %63 {strides = array<i32>} : memref<1x1xf32, #tpu.memory_space<vmem>>, vector<1x1xf32>,
    %c0_i32_26 = arith.constant 0 : i32
    %65 = arith.cmpi eq, %arg1, %c0_i32_26 : i32
    %66 = arith.extui %65 : i1 to i32
    %c0_i32_27 = arith.constant 0 : i32
    %67 = arith.cmpi ne, %66, %c0_i32_27 : i32
    scf.if %67 {
      %c0_28 = arith.constant 0 : index
      %c0_29 = arith.constant 0 : index
      %68 = vector.load %arg7[%c0_28, %c0_29] : memref<1x1xf32, #tpu.memory_space<vmem>>, vector<1x1xf32>
      %c0_30 = arith.constant 0 : index
      %c0_31 = arith.constant 0 : index
      %c0_32 = arith.constant 0 : index
      %69 = vector.load %arg5[%c0_30, %c0_31, %c0_32] : memref<1x1x1xf32, #tpu.memory_space<vmem>>, vector<1x1x1xf32>
      %70 = vector.shape_cast %69 : vector<1x1x1xf32> to vector<1x1xf32>
      %71 = vector.shape_cast %68 : vector<1x1xf32> to vector<1x1x1xf32>
      tpu.vector_store %arg5[%c0_30, %c0_31, %c0_32], %71 {strides = array<i32>} : memref<1x1x1xf32, #tpu.memory_space<vmem>>, vector<1x1x1xf32>,
      %c0_33 = arith.constant 0 : index
      %c0_34 = arith.constant 0 : index
      %72 = vector.load %arg8[%c0_33, %c0_34] : memref<1x1xf32, #tpu.memory_space<vmem>>, vector<1x1xf32>
      %c0_35 = arith.constant 0 : index
      %c0_36 = arith.constant 0 : index
      %c0_37 = arith.constant 0 : index
      %73 = vector.load %arg6[%c0_35, %c0_36, %c0_37] : memref<1x1x1xf32, #tpu.memory_space<vmem>>, vector<1x1x1xf32>
      %74 = vector.shape_cast %73 : vector<1x1x1xf32> to vector<1x1xf32>
      %75 = vector.shape_cast %72 : vector<1x1xf32> to vector<1x1x1xf32>
      tpu.vector_store %arg6[%c0_35, %c0_36, %c0_37], %75 {strides = array<i32>} : memref<1x1x1xf32, #tpu.memory_space<vmem>>, vector<1x1x1xf32>,
    } else {
    }
    return
  }
  func.func @transform_0(%arg0: i32, %arg1: i32) -> (i32, i32) {
    %c1_i32 = arith.constant 1 : i32
    %0 = arith.muli %arg0, %c1_i32 : i32
    %1 = arith.addi %0, %arg1 : i32
    %c0_i32 = arith.constant 0 : i32
    %2 = arith.minsi %1, %c0_i32 : i32
    %c0_i32_0 = arith.constant 0 : i32
    %c0_i32_1 = arith.constant 0 : i32
    return %2, %c0_i32_0 : i32, i32
  }
  func.func @transform_1(%arg0: i32, %arg1: i32) -> (i32, i32) {
    %c1_i32 = arith.constant 1 : i32
    %0 = arith.muli %arg0, %c1_i32 : i32
    %1 = arith.addi %0, %arg1 : i32
    %c0_i32 = arith.constant 0 : i32
    %2 = arith.minsi %1, %c0_i32 : i32
    %c0_i32_0 = arith.constant 0 : i32
    %c0_i32_1 = arith.constant 0 : i32
    return %2, %c0_i32_0 : i32, i32
  }
  func.func @transform_2(%arg0: i32, %arg1: i32) -> (i32, i32) {
    %c0_i32 = arith.constant 0 : i32
    %c0_i32_0 = arith.constant 0 : i32
    %c0_i32_1 = arith.constant 0 : i32
    return %c0_i32, %c0_i32_0 : i32, i32
  }
  func.func @transform_3(%arg0: i32, %arg1: i32) -> (i32, i32, i32) {
    %c0_i32 = arith.constant 0 : i32
    %c0_i32_0 = arith.constant 0 : i32
    %c0_i32_1 = arith.constant 0 : i32
    return %arg0, %c0_i32, %c0_i32_0 : i32, i32, i32
  }
  func.func @transform_4(%arg0: i32, %arg1: i32) -> (i32, i32, i32) {
    %c0_i32 = arith.constant 0 : i32
    %c0_i32_0 = arith.constant 0 : i32
    %c0_i32_1 = arith.constant 0 : i32
    return %arg0, %c0_i32, %c0_i32_0 : i32, i32, i32
  }
}

</mosaic_0001>

<bundles_post_ra>
// kernel: tpu_custom_call.1
= control target key start
LH: loop header
LB: loop body
LE: loop exit
PB: predicated region body
PF: predicated region fallthrough
CT: control target
= control target key end

     0   :  { %10 = vsyncpa [#allocation5], 0  ;;  %vm168_vm0 = vcmask 80896   ;;  %v619_v6 = vmov 0   ;;  %s897_s0 = inlined_call_operand.vmem [shape: f32[64,10], index: 0, kind: input, shape index: {}]   ;;  %s898_s1 = inlined_call_operand.vmem [shape: s32[64,1], index: 1, kind: input, shape index: {}]   ;;  %s899_s2 = inlined_call_operand.vmem [shape: f32[1,10], index: 2, kind: input, shape index: {}]   ;;  %s900_s3 = inlined_call_operand.hbm [shape: f32[1,1,1], index: 3, kind: output, shape index: {0}]   ;;  %s901_s4 = inlined_call_operand.hbm [shape: f32[1,1,1], index: 4, kind: output, shape index: {1}]  }
   0x1   :  { %v91_v0 = vld [vmem:[%s897_s0 + $0x10] sm:$0xff]  ;;  %v89_v1 = vld [vmem:[%s897_s0] sm:$0xff]  ;;  %v92_v2 = vld [vmem:[%s897_s0 + $0x18] sm:$0xff]  ;;  %522 = vset.pattern.permute.xlu1 %v619_v6  ;;  %521 = vset.pattern.permute.xlu0 %v619_v6 }
   0x2   :  { %v175_v3 = vsel %vm168_vm0, %v91_v0, -inf  ;;  %v169_v4 = vsel %vm168_vm0, %v89_v1, -inf  ;;  %v90_v5 = vld [vmem:[%s897_s0 + $0x8] sm:$0xff]  ;;  %v178_v7 = vsel %vm168_vm0, %v92_v2, -inf  ;;  %v93_v10 = vld [vmem:[%s897_s0 + $0x20] sm:$0xff] }
   0x3   :  { %176 = vmax.xlane.f32.xlu1 %v175_v3  ;;  %170 = vmax.xlane.f32.xlu0 %v169_v4  ;;  %v172_v8 = vsel %vm168_vm0, %v90_v5, -inf  ;;  %v94_v9 = vld [vmem:[%s897_s0 + $0x28] sm:$0xff] }
   0x4   :  { %11 = vsyncpa [#allocation7], 0  ;;  %v184_v11 = vsel %vm168_vm0, %v94_v9, -inf  ;;  %v181_v12 = vsel %vm168_vm0, %v93_v10, -inf  ;;  %v96_v13 = vld [vmem:[%s897_s0 + $0x38] sm:$0xff]  ;;  %v95_v14 = vld [vmem:[%s897_s0 + $0x30] sm:$0xff]  ;;  %v134_v53 = vlaneseq }
   0x5   :  { %v190_v15 = vsel %vm168_vm0, %v96_v13, -inf  ;;  %v187_v16 = vsel %vm168_vm0, %v95_v14, -inf  ;;  %v98_v17 = vld [vmem:[%s898_s1 + $0x8] sm:$0xff]  ;;  %v99_v18 = vld [vmem:[%s898_s1 + $0x10] sm:$0xff]  ;;  %v97_v19 = vld [vmem:[%s898_s1] sm:$0xff]  ;;  %vm408_vm9 = vcmask 7168  }
   0x6   :  { %v100_v20 = vld [vmem:[%s898_s1 + $0x18] sm:$0xff]  ;;  %v101_v21 = vld [vmem:[%s898_s1 + $0x20] sm:$0xff]  ;;  %v102_v22 = vld [vmem:[%s898_s1 + $0x28] sm:$0xff]  ;;  %v732_v60 = vand.u32 127, %v134_v53  ;;  %vm86_vm10 = vcmask 0   ;;  %s621_s22 = smov [#allocation4]  }
   0x7   :  { %179 = vmax.xlane.f32.xlu1 %v178_v7  ;;  %173 = vmax.xlane.f32.xlu0 %v172_v8  ;;  %v103_v23 = vld [vmem:[%s898_s1 + $0x30] sm:$0xff]  ;;  %v104_v24 = vld [vmem:[%s898_s1 + $0x38] sm:$0xff]  ;;  %s478_s23 = sshll.u32 %s621_s22, 4  ;;  %s622_s24 = smov [#allocation6]   ;;  %s479_s23 = int_to_ptr.vmem [resolvable:$true] %s478_s23 }
   0x8   :  { %s488_s25 = sshll.u32 %s622_s24, 4  ;;  %s571_s26 = scalar_lea.vmem %s479_s23, 16  ;;  %s863_s25 = int_to_ptr.vmem [resolvable:$true] %s488_s25 }
   0x9   :  { %p572_p0 = scmp.ne.s32.totalorder %s479_s23, %s571_s26  ;;  %s575_s27 = scalar_lea.vmem %s479_s23, 32 }
   0xa   :  { %p576_p1 = scmp.lt.s32.totalorder %s479_s23, %s479_s23  ;;  %p577_p2 = scmp.lt.s32.totalorder %s575_s27, %s571_s26 }
   0xb   :  { %185 = vmax.xlane.f32.xlu1 %v184_v11  ;;  %182 = vmax.xlane.f32.xlu0 %v181_v12 }
   0xc   :  { %p578_p3 = por %p577_p2, %p576_p1 }
   0xe   :  { %p579_p4 = pnand %p578_p3, %p572_p0 }
   0xf   :  { %191 = vmax.xlane.f32.xlu1 %v190_v15  ;;  %188 = vmax.xlane.f32.xlu0 %v187_v16 }
  0x20   :  { %140 = vperm.xlu1 %522, %v98_v17  }
  0x24   :  { %143 = vperm.xlu1 %522, %v99_v18  }
  0x25   :  { %137 = vperm.xlu0 %521, %v97_v19  }
  0x28   :  { %146 = vperm.xlu1 %522, %v100_v20  }
  0x2c   :  { %149 = vperm.xlu1 %522, %v101_v21  }
  0x30   :  { %152 = vperm.xlu1 %522, %v102_v22  }
  0x34   :  { %155 = vperm.xlu1 %522, %v103_v23  }
  0x38   :  { %158 = vperm.xlu1 %522, %v104_v24   ;;  %v512_v24 = vld [vmem:[%s899_s2] ss:$0 sm:$0xff] }
  0x90   :  { %v177_v25 = vpop.xlane.xlu1 %176  ;;  %v171_v26 = vpop.xlane.xlu0 %170 }
  0x91   :  { %v704_v27 = vsub.f32 %v89_v1, %v171_v26  ;;  %v707_v29 = vsub.f32 %v91_v0, %v177_v25 }
  0x93   :  { %v201_v28 = vmul.f32 1.442695, %v704_v27  ;;  %v205_v36 = vmul.f32 1.442695, %v707_v29 }
  0x94   :  { %v180_v30 = vpop.xlane.xlu1 %179  ;;  %v174_v31 = vpop.xlane.xlu0 %173 }
  0x95   :  { %v709_v32 = vsub.f32 %v92_v2, %v180_v30  ;;  %v194_v33 = vsub.f32 %v90_v5, %v174_v31  ;;  %523 = vpow2.f32 %v201_v28 }
  0x97   :  { %v207_v34 = vmul.f32 1.442695, %v709_v32  ;;  %v203_v35 = vmul.f32 1.442695, %v194_v33 }
  0x98   :  { %v186_v37 = vpop.xlane.xlu1 %185  ;;  %v183_v38 = vpop.xlane.xlu0 %182 }
  0x99   :  { %525 = vpow2.f32 %v207_v34  ;;  %v713_v39 = vsub.f32 %v94_v9, %v186_v37  ;;  %v715_v40 = vsub.f32 %v93_v10, %v183_v38 }
  0x9a   :  { %527 = vpow2.f32 %v203_v35 }
  0x9b   :  { %v211_v41 = vmul.f32 1.442695, %v713_v39  ;;  %v209_v42 = vmul.f32 1.442695, %v715_v40  ;;  %529 = vpow2.f32 %v205_v36 }
  0x9c   :  { %v192_v43 = vpop.xlane.xlu1 %191  ;;  %v189_v44 = vpop.xlane.xlu0 %188 }
  0x9d   :  { %531 = vpow2.f32 %v211_v41  ;;  %v719_v45 = vsub.f32 %v96_v13, %v192_v43  ;;  %v721_v46 = vsub.f32 %v95_v14, %v189_v44 }
  0x9e   :  { %533 = vpow2.f32 %v209_v42 }
  0x9f   :  { %v215_v47 = vmul.f32 1.442695, %v719_v45  ;;  %v213_v48 = vmul.f32 1.442695, %v721_v46  ;;  %v524_v49 = vpop.eup %523 }
  0xa0   :  { %v725_v50 = vpop.permute.xlu1 %140  ;;  %v217_v51 = vsel %vm168_vm0, %v524_v49, 0.0 }
  0xa1   :  { %535 = vpow2.f32 %v215_v47  ;;  %218 = vadd.xlane.f32.xlu1 %v217_v51  ;;  %vm161_vm1 = vcmp.eq.s32.totalorder %v732_v60, %v725_v50 }
  0xa2   :  { %537 = vpow2.f32 %v213_v48  ;;  %v242_v7 = vsel %vm161_vm1, %v194_v33, 0.0  ;;  %v280_v26 = vsel %vm161_vm1, %v512_v24, 0.0 }
  0xa3   :  { %v526_v52 = vpop.eup %525  ;;  %v252_v10 = vsel %vm168_vm0, %v242_v7, 0.0  ;;  %v290_v28 = vsel %vm168_vm0, %v280_v26, 0.0 }
  0xa4   :  { %v528_v54 = vpop.eup %527  ;;  %v728_v55 = vpop.permute.xlu1 %143  ;;  %v226_v56 = vsel %vm168_vm0, %v526_v52, 0.0 }
  0xa5   :  { %v220_v57 = vsel %vm168_vm0, %v528_v54, 0.0  ;;  %v530_v58 = vpop.eup %529  ;;  %227 = vadd.xlane.f32.xlu1 %v226_v56  ;;  %v138_v4 = vpop.permute.xlu0 %137  ;;  %vm162_vm4 = vcmp.eq.s32.totalorder %v732_v60, %v728_v55 }
  0xa6   :  { %221 = vadd.xlane.f32.xlu0 %v220_v57  ;;  %v223_v0 = vsel %vm168_vm0, %v530_v58, 0.0  ;;  %vm160_vm2 = vcmp.eq.s32.totalorder %v732_v60, %v138_v4  ;;  %v243_v17 = vsel %vm162_vm4, %v707_v29, 0.0  ;;  %v281_v35 = vsel %vm162_vm4, %v512_v24, 0.0 }
  0xa7   :  { %v532_v59 = vpop.eup %531  ;;  %v241_v12 = vsel %vm160_vm2, %v704_v27, 0.0  ;;  %v255_v20 = vsel %vm168_vm0, %v243_v17, 0.0  ;;  %v279_v31 = vsel %vm160_vm2, %v512_v24, 0.0  ;;  %v293_v37 = vsel %vm168_vm0, %v281_v35, 0.0 }
  0xa8   :  { %v534_v61 = vpop.eup %533  ;;  %v147_v62 = vpop.permute.xlu1 %146  ;;  %v232_v63 = vsel %vm168_vm0, %v532_v59, 0.0  ;;  %v249_v15 = vsel %vm168_vm0, %v241_v12, 0.0  ;;  %v287_v33 = vsel %vm168_vm0, %v279_v31, 0.0 }
  0xa9   :  { %233 = vadd.xlane.f32.xlu1 %v232_v63  ;;  %v229_v2 = vsel %vm168_vm0, %v534_v61, 0.0  ;;  %vm163_vm3 = vcmp.eq.s32.totalorder %v732_v60, %v147_v62 }
  0xaa   :  { %224 = vadd.xlane.f32.xlu0 %v223_v0  ;;  %v244_v11 = vsel %vm163_vm3, %v709_v32, 0.0  ;;  %v282_v30 = vsel %vm163_vm3, %v512_v24, 0.0 }
  0xab   :  { %v536_v1 = vpop.eup %535  ;;  %v258_v14 = vsel %vm168_vm0, %v244_v11, 0.0  ;;  %v296_v32 = vsel %vm168_vm0, %v282_v30, 0.0 }
  0xac   :  { %v538_v3 = vpop.eup %537  ;;  %v150_v5 = vpop.permute.xlu1 %149  ;;  %v238_v6 = vsel %vm168_vm0, %v536_v1, 0.0 }
  0xad   :  { %239 = vadd.xlane.f32.xlu1 %v238_v6  ;;  %v235_v8 = vsel %vm168_vm0, %v538_v3, 0.0  ;;  %vm164_vm6 = vcmp.eq.s32.totalorder %v732_v60, %v150_v5 }
  0xae   :  { %230 = vadd.xlane.f32.xlu0 %v229_v2  ;;  %v245_v22 = vsel %vm164_vm6, %v715_v40, 0.0 }
  0xaf   :  { %v261_v25 = vsel %vm168_vm0, %v245_v22, 0.0 }
  0xb0   :  { %v153_v9 = vpop.permute.xlu1 %152 }
  0xb1   :  { %253 = vadd.xlane.f32.xlu1 %v252_v10  ;;  %vm165_vm5 = vcmp.eq.s32.totalorder %v732_v60, %v153_v9 }
  0xb2   :  { %236 = vadd.xlane.f32.xlu0 %v235_v8  ;;  %v246_v16 = vsel %vm165_vm5, %v713_v39, 0.0  ;;  %v284_v34 = vsel %vm165_vm5, %v512_v24, 0.0  ;;  %v283_v39 = vsel %vm164_vm6, %v512_v24, 0.0 }
  0xb3   :  { %v264_v19 = vsel %vm168_vm0, %v246_v16, 0.0  ;;  %v302_v36 = vsel %vm168_vm0, %v284_v34, 0.0  ;;  %v299_v41 = vsel %vm168_vm0, %v283_v39, 0.0 }
  0xb4   :  { %v156_v13 = vpop.permute.xlu1 %155 }
  0xb5   :  { %259 = vadd.xlane.f32.xlu1 %v258_v14  ;;  %vm166_vm8 = vcmp.eq.s32.totalorder %v732_v60, %v156_v13 }
  0xb6   :  { %250 = vadd.xlane.f32.xlu0 %v249_v15  ;;  %v247_v27 = vsel %vm166_vm8, %v721_v46, 0.0  ;;  %v285_v42 = vsel %vm166_vm8, %v512_v24, 0.0 }
  0xb7   :  { %v267_v29 = vsel %vm168_vm0, %v247_v27, 0.0  ;;  %v305_v43 = vsel %vm168_vm0, %v285_v42, 0.0 }
  0xb8   :  { %v159_v18 = vpop.permute.xlu1 %158 }
  0xb9   :  { %vm167_vm7 = vcmp.eq.s32.totalorder %v732_v60, %v159_v18  ;;  %265 = vadd.xlane.f32.xlu1 %v264_v19 }
  0xba   :  { %256 = vadd.xlane.f32.xlu0 %v255_v20  ;;  %v248_v21 = vsel %vm167_vm7, %v719_v45, 0.0  ;;  %v286_v38 = vsel %vm167_vm7, %v512_v24, 0.0 }
  0xbb   :  { %v270_v23 = vsel %vm168_vm0, %v248_v21, 0.0  ;;  %v308_v40 = vsel %vm168_vm0, %v286_v38, 0.0 }
  0xbd   :  { %271 = vadd.xlane.f32.xlu1 %v270_v23 }
  0xbe   :  { %262 = vadd.xlane.f32.xlu0 %v261_v25 }
  0xc1   :  { %291 = vadd.xlane.f32.xlu1 %v290_v28 }
  0xc2   :  { %268 = vadd.xlane.f32.xlu0 %v267_v29 }
  0xc5   :  { %297 = vadd.xlane.f32.xlu1 %v296_v32 }
  0xc6   :  { %288 = vadd.xlane.f32.xlu0 %v287_v33 }
  0xc9   :  { %303 = vadd.xlane.f32.xlu1 %v302_v36 }
  0xca   :  { %294 = vadd.xlane.f32.xlu0 %v293_v37 }
  0xcd   :  { %309 = vadd.xlane.f32.xlu1 %v308_v40 }
  0xce   :  { %300 = vadd.xlane.f32.xlu0 %v299_v41 }
  0xd2   :  { %306 = vadd.xlane.f32.xlu0 %v305_v43 }
 0x12e   :  { %v219_v44 = vpop.xlane.xlu1 %218 }
 0x12f   :  { %539 = vlog2.f32 %v219_v44 }
 0x132   :  { %v228_v45 = vpop.xlane.xlu1 %227 }
 0x133   :  { %v222_v46 = vpop.xlane.xlu0 %221  ;;  %541 = vlog2.f32 %v228_v45 }
 0x134   :  { %543 = vlog2.f32 %v222_v46 }
 0x136   :  { %v234_v47 = vpop.xlane.xlu1 %233 }
 0x137   :  { %v225_v48 = vpop.xlane.xlu0 %224  ;;  %545 = vlog2.f32 %v234_v47 }
 0x138   :  { %547 = vlog2.f32 %v225_v48 }
 0x139   :  { %v540_v51 = vpop.eup %539 }
 0x13a   :  { %v240_v49 = vpop.xlane.xlu1 %239  ;;  %v312_v60 = vmul.f32 0.6931472, %v540_v51 }
 0x13b   :  { %v231_v50 = vpop.xlane.xlu0 %230  ;;  %549 = vlog2.f32 %v240_v49 }
 0x13c   :  { %551 = vlog2.f32 %v231_v50 }
 0x13d   :  { %v542_v52 = vpop.eup %541 }
 0x13e   :  { %v544_v53 = vpop.eup %543  ;;  %v254_v54 = vpop.xlane.xlu1 %253  ;;  %v318_v57 = vmul.f32 0.6931472, %v542_v52 }
 0x13f   :  { %v237_v55 = vpop.xlane.xlu0 %236  ;;  %v314_v56 = vmul.f32 0.6931472, %v544_v53 }
 0x140   :  { %553 = vlog2.f32 %v237_v55 }
 0x141   :  { %v546_v58 = vpop.eup %545  ;;  %v811_v59 = vsub.f32 %v314_v56, %v254_v54 }
 0x142   :  { %v260_v61 = vpop.xlane.xlu1 %259  ;;  %v548_v63 = vpop.eup %547  ;;  %v322_v3 = vmul.f32 0.6931472, %v546_v58 }
 0x143   :  { %v251_v62 = vpop.xlane.xlu0 %250  ;;  %v336_v0 = vsub.f32 0.0, %v811_v59  ;;  %v814_v1 = vsub.f32 %v318_v57, %v260_v61  ;;  %v316_v10 = vmul.f32 0.6931472, %v548_v63 }
 0x144   :  { %v816_v2 = vsub.f32 %v312_v60, %v251_v62 }
 0x145   :  { %v550_v4 = vpop.eup %549  ;;  %v345_v5 = vmul.f32 1.442695, %v336_v0  ;;  %v338_v6 = vsub.f32 0.0, %v814_v1 }
 0x146   :  { %v335_v7 = vsub.f32 0.0, %v816_v2  ;;  %v552_v8 = vpop.eup %551  ;;  %v266_v9 = vpop.xlane.xlu1 %265  ;;  %v326_v12 = vmul.f32 0.6931472, %v550_v4 }
 0x147   :  { %v257_v11 = vpop.xlane.xlu0 %256  ;;  %555 = vpow2.f32 %v345_v5  ;;  %v349_v13 = vmul.f32 1.442695, %v338_v6  ;;  %v820_v15 = vsub.f32 %v322_v3, %v266_v9  ;;  %v320_v18 = vmul.f32 0.6931472, %v552_v8 }
 0x148   :  { %v343_v14 = vmul.f32 1.442695, %v335_v7  ;;  %v822_v16 = vsub.f32 %v316_v10, %v257_v11 }
 0x149   :  { %557 = vpow2.f32 %v349_v13  ;;  %v340_v17 = vsub.f32 0.0, %v820_v15 }
 0x14a   :  { %v554_v19 = vpop.eup %553  ;;  %559 = vpow2.f32 %v343_v14  ;;  %v337_v20 = vsub.f32 0.0, %v822_v16  ;;  %v272_v21 = vpop.xlane.xlu1 %271 }
 0x14b   :  { %v263_v22 = vpop.xlane.xlu0 %262  ;;  %v353_v23 = vmul.f32 1.442695, %v340_v17  ;;  %v826_v24 = vsub.f32 %v326_v12, %v272_v21  ;;  %v324_v29 = vmul.f32 0.6931472, %v554_v19 }
 0x14c   :  { %v828_v25 = vsub.f32 %v320_v18, %v263_v22  ;;  %v347_v26 = vmul.f32 1.442695, %v337_v20 }
 0x14d   :  { %561 = vpow2.f32 %v353_v23  ;;  %v342_v27 = vsub.f32 0.0, %v826_v24 }
 0x14e   :  { %v339_v28 = vsub.f32 0.0, %v828_v25  ;;  %563 = vpow2.f32 %v347_v26  ;;  %v292_v30 = vpop.xlane.xlu1 %291 }
 0x14f   :  { %v269_v31 = vpop.xlane.xlu0 %268  ;;  %v357_v32 = vmul.f32 1.442695, %v342_v27  ;;  %v439_v46 = vsel %vm408_vm9, %v292_v30, 0.0 }
 0x150   :  { %v351_v33 = vmul.f32 1.442695, %v339_v28  ;;  %v832_v34 = vsub.f32 %v324_v29, %v269_v31 }
 0x151   :  { %v556_v35 = vpop.eup %555  ;;  %565 = vpow2.f32 %v357_v32 }
 0x152   :  { %v341_v36 = vsub.f32 0.0, %v832_v34  ;;  %567 = vpow2.f32 %v351_v33  ;;  %v360_v37 = vsub.f32 1.0, %v556_v35  ;;  %v298_v38 = vpop.xlane.xlu1 %297 }
 0x153   :  { %v289_v39 = vpop.xlane.xlu0 %288  ;;  %v558_v40 = vpop.eup %557  ;;  %v443_v60 = vsel %vm408_vm9, %v298_v38, 0.0 }
 0x154   :  { %v355_v41 = vmul.f32 1.442695, %v341_v36  ;;  %v438_v42 = vsel %vm408_vm9, %v289_v39, 0.0  ;;  %v560_v43 = vpop.eup %559  ;;  %v368_v44 = vmul.f32 %v360_v37, %v360_v37  ;;  %v362_v45 = vsub.f32 1.0, %v558_v40 }
 0x155   :  { %v359_v47 = vsub.f32 1.0, %v560_v43  ;;  %v440_v50 = vadd.f32 %v439_v46, %v438_v42 }
 0x156   :  { %569 = vpow2.f32 %v355_v41  ;;  %v376_v48 = vmul.f32 %v368_v44, %v292_v30  ;;  %v370_v49 = vmul.f32 %v362_v45, %v362_v45  ;;  %v304_v57 = vpop.xlane.xlu1 %303 }
 0x157   :  { %v295_v51 = vpop.xlane.xlu0 %294  ;;  %v562_v52 = vpop.eup %561  ;;  %v367_v53 = vmul.f32 %v359_v47, %v359_v47  ;;  %v447_v14 = vsel %vm408_vm9, %v304_v57, 0.0 }
 0x158   :  { %v441_v54 = vsel %vm408_vm9, %v295_v51, 0.0  ;;  %v564_v55 = vpop.eup %563  ;;  %v364_v56 = vsub.f32 1.0, %v562_v52  ;;  %v384_v63 = vmul.f32 %v376_v48, %v811_v59  ;;  %v378_v0 = vmul.f32 %v370_v49, %v298_v38 }
 0x159   :  { %v442_v58 = vadd.f32 %v441_v54, %v440_v50  ;;  %v375_v61 = vmul.f32 %v367_v53, %v289_v39  ;;  %v361_v62 = vsub.f32 1.0, %v564_v55 }
 0x15a   :  { %v372_v3 = vmul.f32 %v364_v56, %v364_v56  ;;  %v410_v59 = vsel %vm408_vm9, %v384_v63, 0.0  ;;  %v386_v19 = vmul.f32 %v378_v0, %v814_v1  ;;  %v310_v21 = vpop.xlane.xlu1 %309 }
 0x15b   :  { %v444_v4 = vadd.f32 %v443_v60, %v442_v58  ;;  %v301_v5 = vpop.xlane.xlu0 %300  ;;  %v566_v6 = vpop.eup %565  ;;  %v383_v7 = vmul.f32 %v375_v61, %v816_v2  ;;  %v369_v8 = vmul.f32 %v361_v62, %v361_v62  ;;  %v451_v35 = vsel %vm408_vm9, %v310_v21, 0.0 }
 0x15c   :  { %v445_v9 = vsel %vm408_vm9, %v301_v5, 0.0  ;;  %v568_v10 = vpop.eup %567  ;;  %v366_v11 = vsub.f32 1.0, %v566_v6  ;;  %v380_v20 = vmul.f32 %v372_v3, %v304_v57  ;;  %v414_v39 = vsel %vm408_vm9, %v386_v19, 0.0 }
 0x15d   :  { %v446_v12 = vadd.f32 %v445_v9, %v444_v4  ;;  %v409_v13 = vsel %vm408_vm9, %v383_v7, 0.0  ;;  %v377_v17 = vmul.f32 %v369_v8, %v295_v51  ;;  %v363_v18 = vsub.f32 1.0, %v568_v10 }
 0x15e   :  { %v374_v27 = vmul.f32 %v366_v11, %v366_v11  ;;  %v411_v30 = vadd.f32 %v410_v59, %v409_v13  ;;  %v388_v40 = vmul.f32 %v380_v20, %v820_v15 }
 0x15f   :  { %v448_v22 = vadd.f32 %v447_v14, %v446_v12  ;;  %v307_v2 = vpop.xlane.xlu0 %306  ;;  %v385_v26 = vmul.f32 %v377_v17, %v822_v16  ;;  %v371_v28 = vmul.f32 %v363_v18, %v363_v18 }
 0x160   :  { %v570_v23 = vpop.eup %569  ;;  %v449_v29 = vsel %vm408_vm9, %v307_v2, 0.0  ;;  %v382_v16 = vmul.f32 %v374_v27, %v310_v21  ;;  %v418_v47 = vsel %vm408_vm9, %v388_v40, 0.0 }
 0x161   :  { %v365_v31 = vsub.f32 1.0, %v570_v23  ;;  %v450_v32 = vadd.f32 %v449_v29, %v448_v22  ;;  %v412_v33 = vsel %vm408_vm9, %v385_v26, 0.0  ;;  %v379_v36 = vmul.f32 %v371_v28, %v301_v5 }
 0x162   :  { %v413_v1 = vadd.f32 %v412_v33, %v411_v30  ;;  %v390_v48 = vmul.f32 %v382_v16, %v826_v24 }
 0x163   :  { %v373_v37 = vmul.f32 %v365_v31, %v365_v31  ;;  %v452_v38 = vadd.f32 %v451_v35, %v450_v32  ;;  %v387_v41 = vmul.f32 %v379_v36, %v828_v25  ;;  %v620_v25 = vmov 0.0  }
 0x164   :  { %v415_v42 = vadd.f32 %v414_v39, %v413_v1  ;;  %v422_v15 = vsel %vm408_vm9, %v390_v48, 0.0  ;;  %87 = vst.msk [vmem:[#allocation2] sm:$0x1] %vm86_vm10, %v620_v25  ;;  %88 = vst.msk [vmem:[#allocation3] sm:$0x1] %vm86_vm10, %v620_v25 }
 0x165   :  { %v381_v43 = vmul.f32 %v373_v37, %v307_v2  ;;  %453 = vadd.xlane.f32.xlu1 %v452_v38  ;;  %v416_v44 = vsel %vm408_vm9, %v387_v41, 0.0 }
 0x166   :  { %v417_v45 = vadd.f32 %v416_v44, %v415_v42 }
 0x167   :  { %v389_v46 = vmul.f32 %v381_v43, %v832_v34 }
 0x168   :  { %v419_v49 = vadd.f32 %v418_v47, %v417_v45 }
 0x169   :  { %v420_v50 = vsel %vm408_vm9, %v389_v46, 0.0 }
 0x16a   :  { %v421_v51 = vadd.f32 %v420_v50, %v419_v49 }
 0x16b   :  { %v407_v4 = vld [vmem:[#allocation2] sm:$0x1]  ;;  %v437_v5 = vld [vmem:[#allocation3] sm:$0x1] }
 0x16c   :  { %v423_v52 = vadd.f32 %v422_v15, %v421_v51 }
 0x16e   :  { %424 = vadd.xlane.f32.xlu0 %v423_v52 }
 0x1f2   :  { %v454_v53 = vpop.xlane.xlu1 %453 }
 0x1f3   :  { %v455_v34 = vrot.slane %v454_v53, 4 }
 0x1f5   :  { %v456_v54 = vadd.f32 %v455_v34, %v454_v53 }
 0x1f7   :  { %v457_v55 = vrot.slane %v456_v54, 2 }
 0x1f9   :  { %v458_v58 = vadd.f32 %v457_v55, %v456_v54 }
 0x1fb   :  { %v425_v56 = vpop.xlane.xlu0 %424  ;;  %v459_v62 = vrot.slane %v458_v58, 1 }
 0x1fc   :  { %v426_v24 = vrot.slane %v425_v56, 4 }
 0x1fd   :  { %v460_v3 = vadd.f32 %v459_v62, %v458_v58 }
 0x1fe   :  { %v427_v57 = vadd.f32 %v426_v24, %v425_v56 }
 0x200   :  { %v428_v60 = vrot.slane %v427_v57, 2 }
 0x202   :  { %v429_v61 = vadd.f32 %v428_v60, %v427_v57 }
 0x204   :  { %v430_v63 = vrot.slane %v429_v61, 1 }
 0x206   :  { %v431_v0 = vadd.f32 %v430_v63, %v429_v61 }
 0x208   :  { %513 = vpush %v431_v0 }
 0x209   :  { %515 = vpush %v460_v3 }
 0x239   :  { %s514_s2 = spop %513 }
 0x23a   :  { %v433_v6 = vstv %s514_s2  ;;  %s516_s21 = spop %515 }
 0x23b   :  { %v434_v7 = vadd.f32 %v433_v6, %v407_v4  ;;  %v462_v8 = vstv %s516_s21 }
 0x23c   :  { %v463_v9 = vadd.f32 %v462_v8, %v437_v5 }
 0x23d   :  { %436 = vst.msk [vmem:[#allocation2] sm:$0x1] %vm86_vm10, %v434_v7 }
 0x23e   :  { %464 = vst.msk [vmem:[#allocation3] sm:$0x1] %vm86_vm10, %v463_v9 }
 0x244   :  { %v468_v10 = vld [vmem:[#allocation2] sm:$0x1] }
 0x245   :  { %469 = vst.msk [vmem:[#allocation4] sm:$0x1] %vm86_vm10, %v468_v10  ;;  %v470_v11 = vld [vmem:[#allocation3] sm:$0x1] }
 0x246   :  { %582 = shalt.err (!%p579_p4)
}
 0x247   :  { %s583_s30 = scalar_lea.hbm %s900_s3, 16 }
 0x248   :  { %p584_p5 = scmp.ne.s32.totalorder %s900_s3, %s583_s30  ;;  %p587_p6 = scmp.lt.u32.totalorder %s583_s30, %s900_s3 }
 0x24a   :  { %p589_p7 = pnand %p587_p6, %p584_p5 }
 0x24c   :  { %592 = shalt.err (!%p589_p7)
}
 0x24d   :  { %481 = dma.vmem_to_hbm [thread:$0]  %s479_s23, 16, %s900_s3, [#allocation5]   ;;  %471 = vst.msk [vmem:[#allocation6] sm:$0x1] %vm86_vm10, %v470_v11 }
 0x24e   :  { %s593_s0 = scalar_lea.vmem %s863_s25, 16  ;;  %s597_s11 = scalar_lea.vmem %s863_s25, 32 }
 0x24f   :  { %p594_p8 = scmp.ne.s32.totalorder %s863_s25, %s593_s0  ;;  %p598_p9 = scmp.lt.s32.totalorder %s863_s25, %s863_s25 }
 0x250   :  { %p599_p10 = scmp.lt.s32.totalorder %s597_s11, %s593_s0 }
 0x252   :  { %p600_p11 = por %p599_p10, %p598_p9 }
 0x254   :  { %p601_p12 = pnand %p600_p11, %p594_p8 }
 0x256   :  { %604 = shalt.err (!%p601_p12)
}
 0x257   :  { %s605_s14 = scalar_lea.hbm %s901_s4, 16 }
 0x258   :  { %p606_p13 = scmp.ne.s32.totalorder %s901_s4, %s605_s14  ;;  %p609_p0 = scmp.lt.u32.totalorder %s605_s14, %s901_s4 }
 0x25a   :  { %p611_p1 = pnand %p609_p0, %p606_p13 }
 0x25c   :  { %614 = shalt.err (!%p611_p1)
}
 0x25d   :  { %491 = dma.vmem_to_hbm [thread:$0]  %s863_s25, 16, %s901_s4, [#allocation7]  }
 0x25e   :  { %615 = dma.done.wait [#allocation5], 16  }
 0x25f   :  { %616 = vsyncadd [#allocation5], 4294967280 }
 0x260   :  { %617 = dma.done.wait [#allocation7], 16  }
 0x261   :  { %618 = vsyncadd [#allocation7], 4294967280 }
 0x262   :  { %498 = vsyncpa [#allocation5], 1 }
 0x263   :  { %499 = vsyncpa [#allocation7], 1 }

</bundles_post_ra>
